<compile_context>
chip_gen: v5e
topology: v5e:2x2
jax: 0.10.0
libtpu: 0.0.40
codegen_flags: <defaults>
</compile_context>

<pallas_src>
import jax
import jax.numpy as jnp
import numpy as np
from jax.experimental import pallas as pl
from jax.experimental.pallas import tpu as pltpu

_NEG = -1e30  # f32 bias on padded vocab slots: exp(_NEG - m) underflows to exactly 0.


def _round_up(x, m):
    return (x + m - 1) // m * m


# ----------------------------------------------------------------------------
# Kernel 1: embedding gather + ReLU + single-step GRU (grid=(1,)).
# The gate weights live in VMEM only for this tiny call.
# ----------------------------------------------------------------------------
def gru_step_kernel(tok_ref,      # SMEM (1,) int32 (scalar prefetch; consumed by index_maps)
                    emb_row_ref,  # (1, 1, Hp) bf16  gathered embedding row of `tok`
                    h_ref,        # (1, Hp)    f32   previous hidden state (padded)
                    w_ih_ref,     # (Hp, 3*Hp) bf16  input->hidden gate weights [r|z|n]
                    w_hh_ref,     # (Hp, 3*Hp) bf16  hidden->hidden gate weights [r|z|n]
                    b_ih_ref,     # (1, 3*Hp)  f32
                    b_hh_ref,     # (1, 3*Hp)  f32
                    h_out_ref):   # out (1, Hp) f32  new hidden state
    hp = h_ref.shape[-1]
    # Embedding row + ReLU.  The bf16 row is exact after the up-cast, so the
    # f32 gate GEMVs only see weight-quantization error.
    x = jnp.maximum(emb_row_ref[0].astype(jnp.float32), 0.0)          # (1, Hp)
    h = h_ref[...]                                                    # (1, Hp)
    # Two fused gate GEMVs (gates [r|z|n] concatenated along the lane axis).
    # TODO(synk): for H >= ~2048 split these per gate to bound vreg live ranges.
    gi = jnp.dot(x, w_ih_ref[...].astype(jnp.float32),
                 preferred_element_type=jnp.float32) + b_ih_ref[...]
    gh = jnp.dot(h, w_hh_ref[...].astype(jnp.float32),
                 preferred_element_type=jnp.float32) + b_hh_ref[...]
    r = jax.nn.sigmoid(gi[:, 0:hp] + gh[:, 0:hp])
    z = jax.nn.sigmoid(gi[:, hp:2 * hp] + gh[:, hp:2 * hp])
    n = jnp.tanh(gi[:, 2 * hp:3 * hp] + r * gh[:, 2 * hp:3 * hp])
    h_out_ref[...] = (1.0 - z) * n + z * h                            # padded lanes stay exactly 0


# ----------------------------------------------------------------------------
# Kernel 2: streamed (Hp, Vp) output projection + per-core online logsumexp.
# grid = (num_cores, tiles_per_core); the leading "parallel" axis shards the
# vocab stream across TensorCores (v7x), the trailing "arbitrary" axis carries
# the online (m, l) reduction.
# ----------------------------------------------------------------------------
def vocab_proj_kernel(h_ref,       # (1, Hp)        f32  new hidden state (grid-invariant)
                      w_out_ref,   # (Hp, TILE_V)   bf16 streamed projection tile
                      b_out_ref,   # (1, TILE_V)    f32  streamed bias tile (-1e30 on padding)
                      logits_ref,  # out (1, TILE_V) f32 un-normalized logits tile
                      norm_ref,    # out (8, 128)    f32 per-core logsumexp (broadcast-filled)
                      m_scratch,   # VMEM (1, 1) f32 running max
                      l_scratch):  # VMEM (1, 1) f32 running sum-exp
    j = pl.program_id(1)

    @pl.when(j == 0)
    def _():
        m_scratch[...] = jnp.full((1, 1), -jnp.inf, jnp.float32)
        l_scratch[...] = jnp.zeros((1, 1), jnp.float32)

    # bf16 x bf16 MXU dot with f32 accumulation (casting the tiny (1, Hp) h is free).
    logits = jnp.dot(h_ref[...].astype(jnp.bfloat16), w_out_ref[...],
                     preferred_element_type=jnp.float32) + b_out_ref[...]
    logits_ref[...] = logits                                          # lane-dense (1, TILE_V) store

    m_prev = m_scratch[...]
    m_new = jnp.maximum(m_prev, jnp.max(logits, axis=-1, keepdims=True))
    l_scratch[...] = (l_scratch[...] * jnp.exp(m_prev - m_new)
                      + jnp.sum(jnp.exp(logits - m_new), axis=-1, keepdims=True))
    m_scratch[...] = m_new

    @pl.when(j == pl.num_programs(1) - 1)
    def _():
        norm_ref[...] = jnp.broadcast_to(m_scratch[...] + jnp.log(l_scratch[...]),
                                         norm_ref.shape)


def pack_params(params, tile_v, num_cores):
    """PyTorch-layout params -> padded, pre-transposed, gate-concatenated, bf16 kernel layout."""
    V, H = params["embedding"].shape
    hp = _round_up(H, 128)
    vp = _round_up(V, tile_v * num_cores)
    bf16, f32 = jnp.bfloat16, jnp.float32

    # (V, 1, Hp): the scalar-prefetched gather DMAs a single (1, 1, Hp) row, never the table.
    emb = jnp.zeros((V, 1, hp), bf16).at[:, 0, :H].set(params["embedding"].astype(bf16))

    w_ih3 = jnp.zeros((hp, 3 * hp), bf16)
    w_hh3 = jnp.zeros((hp, 3 * hp), bf16)
    b_ih3 = jnp.zeros((1, 3 * hp), f32)
    b_hh3 = jnp.zeros((1, 3 * hp), f32)
    for g in range(3):                                   # PyTorch gate order: r, z, n
        w_ih3 = w_ih3.at[:H, g * hp:g * hp + H].set(
            params["w_ih"][g * H:(g + 1) * H, :].T.astype(bf16))
        w_hh3 = w_hh3.at[:H, g * hp:g * hp + H].set(
            params["w_hh"][g * H:(g + 1) * H, :].T.astype(bf16))
        b_ih3 = b_ih3.at[0, g * hp:g * hp + H].set(params["b_ih"][g * H:(g + 1) * H])
        b_hh3 = b_hh3.at[0, g * hp:g * hp + H].set(params["b_hh"][g * H:(g + 1) * H])

    # TODO(synk): on v7x quantize w_out to fp8(e4m3) (int8 on v6e) with per-tile f32 scales
    # for another ~2x HBM reduction; the bias/logits path must stay f32 either way.
    w_out = jnp.zeros((hp, vp), bf16).at[:H, :V].set(params["w_out"].T.astype(bf16))
    b_out = jnp.full((1, vp), _NEG, f32).at[0, :V].set(params["b_out"])

    return dict(emb=emb, w_ih3=w_ih3, w_hh3=w_hh3, b_ih3=b_ih3, b_hh3=b_hh3,
                w_out=w_out, b_out=b_out), hp, vp


def decoder_rnn_forward(token, hidden, packed, *, output_size, tile_v, num_cores):
    """token: int32 (1,); hidden: float32 (1, 1, H); packed: output of pack_params.
    Returns (log_probs (1, V), new_hidden (1, 1, H)) — same as the PyTorch module."""
    hp = packed["w_ih3"].shape[0]
    vp = packed["w_out"].shape[1]
    H = hidden.shape[-1]
    V = output_size
    num_tiles = vp // tile_v
    tiles_per_core = num_tiles // num_cores
    assert tiles_per_core * num_cores == num_tiles

    tok = token.astype(jnp.int32)
    h_p = jnp.zeros((1, hp), jnp.float32).at[:, :H].set(hidden.reshape(1, H))
    # TODO(synk): in an autoregressive decode loop, alias h_p -> h_new via
    # input_output_aliases to avoid an extra HBM hidden buffer per step.

    # ---- step 1: embedding gather + ReLU + GRU (tiny call; gate weights evicted after) ----
    gru_need = 2 * (hp * 2 + hp * 4 + 2 * hp * 3 * hp * 2 + 2 * 3 * hp * 4 + hp * 4)
    gru_vmem = int(min(max(2 * gru_need + (2 << 20), 16 << 20), 64 << 20))

    h_new_p = pl.pallas_call(
        gru_step_kernel,
        out_shape=jax.ShapeDtypeStruct((1, hp), jnp.float32),
        grid_spec=pltpu.PrefetchScalarGridSpec(
            num_scalar_prefetch=1,
            grid=(1,),
            in_specs=[
                pl.BlockSpec((1, 1, hp), lambda i, t: (t[0], 0, 0)),   # embedding row gather
                pl.BlockSpec((1, hp), lambda i, t: (0, 0)),            # h
                pl.BlockSpec((hp, 3 * hp), lambda i, t: (0, 0)),       # w_ih3
                pl.BlockSpec((hp, 3 * hp), lambda i, t: (0, 0)),       # w_hh3
                pl.BlockSpec((1, 3 * hp), lambda i, t: (0, 0)),        # b_ih3
                pl.BlockSpec((1, 3 * hp), lambda i, t: (0, 0)),        # b_hh3
            ],
            out_specs=pl.BlockSpec((1, hp), lambda i, t: (0, 0)),
        ),
        compiler_params=pltpu.CompilerParams(
            dimension_semantics=("arbitrary",),
            vmem_limit_bytes=gru_vmem),
    )(tok, packed["emb"], h_p, packed["w_ih3"], packed["w_hh3"],
      packed["b_ih3"], packed["b_hh3"])

    # ---- step 2: streamed vocab projection + per-core online logsumexp ----
    proj_need = (2 * (hp * tile_v * 2 + tile_v * 4 + tile_v * 4 + hp * 4)
                 + 2 * 8 * 128 * 4 + 64 * 1024)
    proj_vmem = int(min(max(2 * proj_need + (2 << 20), 16 << 20), 64 << 20))

    logits, norm = pl.pallas_call(
        vocab_proj_kernel,
        out_shape=(jax.ShapeDtypeStruct((1, vp), jnp.float32),
                   jax.ShapeDtypeStruct((num_cores * 8, 128), jnp.float32)),
        grid_spec=pltpu.PrefetchScalarGridSpec(
            num_scalar_prefetch=0,
            grid=(num_cores, tiles_per_core),
            in_specs=[
                pl.BlockSpec((1, hp), lambda c, j: (0, 0)),                           # h_new (resident)
                pl.BlockSpec((hp, tile_v), lambda c, j: (0, c * tiles_per_core + j)),  # w_out tile
                pl.BlockSpec((1, tile_v), lambda c, j: (0, c * tiles_per_core + j)),   # b_out tile
            ],
            out_specs=(
                pl.BlockSpec((1, tile_v), lambda c, j: (0, c * tiles_per_core + j)),   # logits tile
                pl.BlockSpec((8, 128), lambda c, j: (c, 0)),                           # per-core lse
            ),
            scratch_shapes=[
                pltpu.VMEM((1, 1), jnp.float32),    # running max
                pltpu.VMEM((1, 1), jnp.float32),    # running sum-exp
            ],
        ),
        compiler_params=pltpu.CompilerParams(
            dimension_semantics=("parallel", "arbitrary"),
            vmem_limit_bytes=proj_vmem),
    )(h_new_p, packed["w_out"], packed["b_out"])

    # Combine per-core logsumexp partials (finite even for all-padding cores since _NEG is finite).
    per_core_lse = norm[0::8, 0]                                      # (num_cores,)
    m = jnp.max(per_core_lse)
    lse = m + jnp.log(jnp.sum(jnp.exp(per_core_lse - m)))
    log_probs = logits[:, :V] - lse                                   # log-softmax
    h_new = h_new_p[:, :H].reshape(1, 1, H)
    return log_probs, h_new


def init_params(key, hidden_size, output_size):
    """Synthetic parameters in PyTorch's native layouts (nn.Embedding / nn.GRU / nn.Linear)."""
    H, V = hidden_size, output_size
    ks = jax.random.split(key, 7)
    s = 1.0 / np.sqrt(H)
    return {
        "embedding": jax.random.normal(ks[0], (V, H), jnp.float32),          # nn.Embedding.weight
        "w_ih": jax.random.uniform(ks[1], (3 * H, H), jnp.float32, -s, s),   # gru.weight_ih_l0 [r|z|n]
        "w_hh": jax.random.uniform(ks[2], (3 * H, H), jnp.float32, -s, s),   # gru.weight_hh_l0
        "b_ih": jax.random.uniform(ks[3], (3 * H,), jnp.float32, -s, s),     # gru.bias_ih_l0
        "b_hh": jax.random.uniform(ks[4], (3 * H,), jnp.float32, -s, s),     # gru.bias_hh_l0
        "w_out": jax.random.uniform(ks[5], (V, H), jnp.float32, -s, s),      # out.weight
        "b_out": jax.random.uniform(ks[6], (V,), jnp.float32, -s, s),        # out.bias
    }


def reference_forward(token, hidden, params):
    """Pure-JAX f32 reproduction of the PyTorch forward (GRU gate order r, z, n)."""
    H = hidden.shape[-1]
    hi = jax.lax.Precision.HIGHEST
    x = jnp.maximum(params["embedding"][token[0]], 0.0)[None, :]      # (1, H)
    h = hidden.reshape(1, H)
    gi = jnp.dot(x, params["w_ih"].T, precision=hi) + params["b_ih"][None, :]
    gh = jnp.dot(h, params["w_hh"].T, precision=hi) + params["b_hh"][None, :]
    i_r, i_z, i_n = gi[:, :H], gi[:, H:2 * H], gi[:, 2 * H:]
    h_r, h_z, h_n = gh[:, :H], gh[:, H:2 * H], gh[:, 2 * H:]
    r = jax.nn.sigmoid(i_r + h_r)
    z = jax.nn.sigmoid(i_z + h_z)
    n = jnp.tanh(i_n + r * h_n)
    h_new = (1.0 - z) * n + z * h
    logits = jnp.dot(h_new, params["w_out"].T, precision=hi) + params["b_out"][None, :]
    logp = jax.nn.log_softmax(logits, axis=1)
    return logp, h_new.reshape(1, 1, H)


if __name__ == "__main__":
    hidden_size = 32
    output_size = 320          # small vocab, > one tile so streaming + online lse is exercised
    tile_v = 256               # lane-dense vocab tile; use 512-2048 at real vocab sizes
    num_cores = 2              # vocab stream split across both TCs on v7x (sequential elsewhere)

    key = jax.random.PRNGKey(0)
    k_param, k_hidden = jax.random.split(key)
    params = init_params(k_param, hidden_size, output_size)
    packed, _, _ = pack_params(params, tile_v, num_cores)

    token = jnp.array([5], dtype=jnp.int32)                                  # input token id
    hidden = jax.random.normal(k_hidden, (1, 1, hidden_size), jnp.float32)   # previous hidden state

    logp, h_new = decoder_rnn_forward(token, hidden, packed,
                                      output_size=output_size, tile_v=tile_v,
                                      num_cores=num_cores)
    jax.block_until_ready((logp, h_new))

    # Weights are stored in bf16 on-device, so compare against an f32 reference whose
    # weights are rounded through bf16 (same quantization, full-precision math).
    q = dict(params)
    for name in ("embedding", "w_ih", "w_hh", "w_out"):
        q[name] = params[name].astype(jnp.bfloat16).astype(jnp.float32)
    ref_logp, ref_h = reference_forward(token, hidden, q)

    np.testing.assert_allclose(np.asarray(h_new), np.asarray(ref_h), rtol=1e-3, atol=1e-3)
    np.testing.assert_allclose(np.asarray(logp), np.asarray(ref_logp), rtol=2e-2, atol=2e-2)

    print("KERNEL_OK")
</pallas_src>

<mosaic_0001>
module attributes {stable_mosaic.version = 11 : i64} {
  func.func @gru_step_kernel(%arg0: i32, %arg1: memref<1xi32, #tpu.memory_space<smem>>, %arg2: memref<1x1x128xbf16, #tpu.memory_space<vmem>>, %arg3: memref<1x128xf32, #tpu.memory_space<vmem>>, %arg4: memref<128x384xbf16, #tpu.memory_space<vmem>>, %arg5: memref<128x384xbf16, #tpu.memory_space<vmem>>, %arg6: memref<1x384xf32, #tpu.memory_space<vmem>>, %arg7: memref<1x384xf32, #tpu.memory_space<vmem>>, %arg8: memref<1x128xf32, #tpu.memory_space<vmem>>) attributes {dimension_semantics = [#tpu.dimension_semantics<arbitrary>], iteration_bounds = array<i64: 1>, scalar_prefetch = 1 : i64, scratch_operands = 0 : i64, tpu.core_type = #tpu.core_type<tc>, window_params = [{transform_indices = @transform_0, window_bounds = array<i64: 1, 1, 128>}, {pipeline_mode = #tpu.pipeline_mode<synchronous>, transform_indices = @transform_1, window_bounds = array<i64: 1, 128>}, {pipeline_mode = #tpu.pipeline_mode<synchronous>, transform_indices = @transform_2, window_bounds = array<i64: 128, 384>}, {pipeline_mode = #tpu.pipeline_mode<synchronous>, transform_indices = @transform_3, window_bounds = array<i64: 128, 384>}, {pipeline_mode = #tpu.pipeline_mode<synchronous>, transform_indices = @transform_4, window_bounds = array<i64: 1, 384>}, {pipeline_mode = #tpu.pipeline_mode<synchronous>, transform_indices = @transform_5, window_bounds = array<i64: 1, 384>}, {pipeline_mode = #tpu.pipeline_mode<synchronous>, transform_indices = @transform_6, window_bounds = array<i64: 1, 128>}]} {
    %c0 = arith.constant 0 : index
    %c0_0 = arith.constant 0 : index
    %c0_1 = arith.constant 0 : index
    %0 = vector.load %arg2[%c0, %c0_0, %c0_1] : memref<1x1x128xbf16, #tpu.memory_space<vmem>>, vector<1x1x128xbf16>
    %1 = vector.shape_cast %0 : vector<1x1x128xbf16> to vector<1x128xbf16>
    %2 = arith.extf %1 : vector<1x128xbf16> to vector<1x128xf32>
    %cst = arith.constant 0.000000e+00 : f32
    %3 = vector.broadcast %cst : f32 to vector<1x128xf32>
    %4 = arith.maximumf %2, %3 : vector<1x128xf32>
    %c0_2 = arith.constant 0 : index
    %c0_3 = arith.constant 0 : index
    %5 = vector.load %arg3[%c0_2, %c0_3] : memref<1x128xf32, #tpu.memory_space<vmem>>, vector<1x128xf32>
    %c0_4 = arith.constant 0 : index
    %c0_5 = arith.constant 0 : index
    %6 = vector.load %arg4[%c0_4, %c0_5] : memref<128x384xbf16, #tpu.memory_space<vmem>>, vector<128x384xbf16>
    %7 = arith.extf %6 : vector<128x384xbf16> to vector<128x384xf32>
    %cst_6 = arith.constant dense<0.000000e+00> : vector<1x384xf32>
    %8 = tpu.matmul %4, %7, %cst_6 {dimension_numbers = #tpu.dot_dimension_numbers<[1], [0], [0], [1], [0, 0, 1, 1], [], []>} : vector<1x128xf32>, vector<128x384xf32>, vector<1x384xf32> -> vector<1x384xf32>
    %c0_7 = arith.constant 0 : index
    %c0_8 = arith.constant 0 : index
    %9 = vector.load %arg6[%c0_7, %c0_8] : memref<1x384xf32, #tpu.memory_space<vmem>>, vector<1x384xf32>
    %10 = arith.addf %8, %9 : vector<1x384xf32>
    %c0_9 = arith.constant 0 : index
    %c0_10 = arith.constant 0 : index
    %11 = vector.load %arg5[%c0_9, %c0_10] : memref<128x384xbf16, #tpu.memory_space<vmem>>, vector<128x384xbf16>
    %12 = arith.extf %11 : vector<128x384xbf16> to vector<128x384xf32>
    %cst_11 = arith.constant dense<0.000000e+00> : vector<1x384xf32>
    %13 = tpu.matmul %5, %12, %cst_11 {dimension_numbers = #tpu.dot_dimension_numbers<[1], [0], [0], [1], [0, 0, 1, 1], [], []>} : vector<1x128xf32>, vector<128x384xf32>, vector<1x384xf32> -> vector<1x384xf32>
    %c0_12 = arith.constant 0 : index
    %c0_13 = arith.constant 0 : index
    %14 = vector.load %arg7[%c0_12, %c0_13] : memref<1x384xf32, #tpu.memory_space<vmem>>, vector<1x384xf32>
    %15 = arith.addf %13, %14 : vector<1x384xf32>
    %16 = vector.extract_strided_slice %10 {offsets = [0, 0], sizes = [1, 128], strides = [1, 1]} : vector<1x384xf32> to vector<1x128xf32>
    %17 = vector.extract_strided_slice %15 {offsets = [0, 0], sizes = [1, 128], strides = [1, 1]} : vector<1x384xf32> to vector<1x128xf32>
    %18 = arith.addf %16, %17 : vector<1x128xf32>
    %19 = arith.negf %18 : vector<1x128xf32>
    %20 = math.exp %19 : vector<1x128xf32>
    %cst_14 = arith.constant 1.000000e+00 : f32
    %21 = vector.broadcast %cst_14 : f32 to vector<1x128xf32>
    %22 = arith.addf %21, %20 : vector<1x128xf32>
    %23 = arith.divf %21, %22 : vector<1x128xf32>
    %24 = vector.extract_strided_slice %10 {offsets = [0, 128], sizes = [1, 128], strides = [1, 1]} : vector<1x384xf32> to vector<1x128xf32>
    %25 = vector.extract_strided_slice %15 {offsets = [0, 128], sizes = [1, 128], strides = [1, 1]} : vector<1x384xf32> to vector<1x128xf32>
    %26 = arith.addf %24, %25 : vector<1x128xf32>
    %27 = arith.negf %26 : vector<1x128xf32>
    %28 = math.exp %27 : vector<1x128xf32>
    %cst_15 = arith.constant 1.000000e+00 : f32
    %29 = vector.broadcast %cst_15 : f32 to vector<1x128xf32>
    %30 = arith.addf %29, %28 : vector<1x128xf32>
    %31 = arith.divf %29, %30 : vector<1x128xf32>
    %32 = vector.extract_strided_slice %10 {offsets = [0, 256], sizes = [1, 128], strides = [1, 1]} : vector<1x384xf32> to vector<1x128xf32>
    %33 = vector.extract_strided_slice %15 {offsets = [0, 256], sizes = [1, 128], strides = [1, 1]} : vector<1x384xf32> to vector<1x128xf32>
    %34 = arith.mulf %23, %33 : vector<1x128xf32>
    %35 = arith.addf %32, %34 : vector<1x128xf32>
    %36 = math.tanh %35 : vector<1x128xf32>
    %cst_16 = arith.constant 1.000000e+00 : f32
    %37 = vector.broadcast %cst_16 : f32 to vector<1x128xf32>
    %38 = arith.subf %37, %31 : vector<1x128xf32>
    %39 = arith.mulf %38, %36 : vector<1x128xf32>
    %40 = arith.mulf %31, %5 : vector<1x128xf32>
    %41 = arith.addf %39, %40 : vector<1x128xf32>
    %c0_17 = arith.constant 0 : index
    %c0_18 = arith.constant 0 : index
    %42 = vector.load %arg8[%c0_17, %c0_18] : memref<1x128xf32, #tpu.memory_space<vmem>>, vector<1x128xf32>
    tpu.vector_store %arg8[%c0_17, %c0_18], %41 {strides = array<i32>} : memref<1x128xf32, #tpu.memory_space<vmem>>, vector<1x128xf32>,
    return
  }
  func.func @transform_0(%arg0: i32, %arg1: memref<1xi32, #tpu.memory_space<smem>>) -> (i32, i32, i32) {
    %c0 = arith.constant 0 : index
    %0 = memref.load %arg1[%c0] : memref<1xi32, #tpu.memory_space<smem>>
    %c0_i32 = arith.constant 0 : i32
    %c0_i32_0 = arith.constant 0 : i32
    %c0_i32_1 = arith.constant 0 : i32
    return %0, %c0_i32, %c0_i32_0 : i32, i32, i32
  }
  func.func @transform_1(%arg0: i32, %arg1: memref<1xi32, #tpu.memory_space<smem>>) -> (i32, i32) {
    %c0_i32 = arith.constant 0 : i32
    %c0_i32_0 = arith.constant 0 : i32
    %c0_i32_1 = arith.constant 0 : i32
    return %c0_i32, %c0_i32_0 : i32, i32
  }
  func.func @transform_2(%arg0: i32, %arg1: memref<1xi32, #tpu.memory_space<smem>>) -> (i32, i32) {
    %c0_i32 = arith.constant 0 : i32
    %c0_i32_0 = arith.constant 0 : i32
    %c0_i32_1 = arith.constant 0 : i32
    return %c0_i32, %c0_i32_0 : i32, i32
  }
  func.func @transform_3(%arg0: i32, %arg1: memref<1xi32, #tpu.memory_space<smem>>) -> (i32, i32) {
    %c0_i32 = arith.constant 0 : i32
    %c0_i32_0 = arith.constant 0 : i32
    %c0_i32_1 = arith.constant 0 : i32
    return %c0_i32, %c0_i32_0 : i32, i32
  }
  func.func @transform_4(%arg0: i32, %arg1: memref<1xi32, #tpu.memory_space<smem>>) -> (i32, i32) {
    %c0_i32 = arith.constant 0 : i32
    %c0_i32_0 = arith.constant 0 : i32
    %c0_i32_1 = arith.constant 0 : i32
    return %c0_i32, %c0_i32_0 : i32, i32
  }
  func.func @transform_5(%arg0: i32, %arg1: memref<1xi32, #tpu.memory_space<smem>>) -> (i32, i32) {
    %c0_i32 = arith.constant 0 : i32
    %c0_i32_0 = arith.constant 0 : i32
    %c0_i32_1 = arith.constant 0 : i32
    return %c0_i32, %c0_i32_0 : i32, i32
  }
  func.func @transform_6(%arg0: i32, %arg1: memref<1xi32, #tpu.memory_space<smem>>) -> (i32, i32) {
    %c0_i32 = arith.constant 0 : i32
    %c0_i32_0 = arith.constant 0 : i32
    %c0_i32_1 = arith.constant 0 : i32
    return %c0_i32, %c0_i32_0 : i32, i32
  }
}

</mosaic_0001>

<bundles_post_ra>
// kernel: tpu_custom_call.1
= control target key start
LH: loop header
LB: loop body
LE: loop exit
PB: predicated region body
PF: predicated region fallthrough
CT: control target
= control target key end

     0   :  { %s782_s0 = inlined_call_operand.<no memory space> [shape: s32[1], index: 0, kind: input, shape index: {}]   ;;  %s783_s1 = inlined_call_operand.vmem [shape: bf16[320,1,128], index: 1, kind: input, shape index: {}]   ;;  %s784_s2 = inlined_call_operand.vmem [shape: f32[1,128], index: 2, kind: input, shape index: {}]   ;;  %s785_s3 = inlined_call_operand.vmem [shape: bf16[128,384], index: 3, kind: input, shape index: {}]   ;;  %s786_s4 = inlined_call_operand.vmem [shape: bf16[128,384], index: 4, kind: input, shape index: {}]   ;;  %s787_s5 = inlined_call_operand.vmem [shape: f32[1,384], index: 5, kind: input, shape index: {}]   ;;  %s788_s6 = inlined_call_operand.vmem [shape: f32[1,384], index: 6, kind: input, shape index: {}]   ;;  %s789_s7 = inlined_call_operand.hbm [shape: f32[1,128], index: 7, kind: output, shape index: {}]  }
   0x1   :  { %v74_v0 = vld [vmem:[%s785_s3 + $0xb4] sm:$0xff]  ;;  %v72_v1 = vld [vmem:[%s785_s3 + $0xa8] sm:$0xff]  ;;  %v70_v6 = vld [vmem:[%s785_s3 + $0x9c] sm:$0xff]  ;;  %p36_p0 = scmp.lt.s32.totalorder %s782_s0, 319 }
   0x2   :  { %v496_v2 = vld [vmem:[%s786_s4 + $0xb4] sm:$0xff]  ;;  %v121_v3 = vunpack.c.l.bf16 %v74_v0  ;;  %v118_v4 = vunpack.c.l.bf16 %v72_v1  ;;  %v505_v7 = vld [vmem:[%s786_s4 + $0xa8] sm:$0xff]  ;;  %v122_v8 = vunpack.c.h.bf16 %v74_v0  ;;  %v514_v11 = vld [vmem:[%s786_s4 + $0x9c] sm:$0xff]  ;;  %v119_v13 = vunpack.c.h.bf16 %v72_v1 }
   0x3   :  { %v269_v5 = vunpack.c.l.bf16 %v496_v2  ;;  %v266_v9 = vunpack.c.l.bf16 %v505_v7  ;;  %v68_v10 = vld [vmem:[%s785_s3 + $0x90] sm:$0xff]  ;;  %v115_v14 = vunpack.c.l.bf16 %v70_v6  ;;  %v263_v15 = vunpack.c.l.bf16 %v514_v11  ;;  %v66_v16 = vld [vmem:[%s785_s3 + $0x84] sm:$0xff]  ;;  %v64_v21 = vld [vmem:[%s785_s3 + $0x78] sm:$0xff] }
   0x4   :  { %v519_v12 = vld [vmem:[%s786_s4 + $0x90] sm:$0xff]  ;;  %132 = vmatpush.msra.mxu0 %v121_v3  ;;  %152 = vmatpush.msra.mxu1 %v122_v8  ;;  %v528_v17 = vld [vmem:[%s786_s4 + $0x84] sm:$0xff]  ;;  %v116_v18 = vunpack.c.h.bf16 %v70_v6  ;;  %v112_v19 = vunpack.c.l.bf16 %v68_v10  ;;  %v537_v22 = vld [vmem:[%s786_s4 + $0x78] sm:$0xff]  ;;  %v113_v23 = vunpack.c.h.bf16 %v68_v10  ;;  %v109_v24 = vunpack.c.l.bf16 %v66_v16 }
   0x5   :  { %280 = vmatpush.msra.mxu3 %v269_v5  ;;  %v260_v20 = vunpack.c.l.bf16 %v519_v12  ;;  %v257_v25 = vunpack.c.l.bf16 %v528_v17  ;;  %v62_v26 = vld [vmem:[%s785_s3 + $0x6c] sm:$0xff]  ;;  %v110_v28 = vunpack.c.h.bf16 %v66_v16  ;;  %v106_v29 = vunpack.c.l.bf16 %v64_v21  ;;  %v60_v31 = vld [vmem:[%s785_s3 + $0x60] sm:$0xff]  ;;  %v75_v36 = vld [vmem:[%s785_s3 + $0xbc] sm:$0xf] }
   0x6   :  { %133 = vmatpush.msra.mxu0 %v118_v4  ;;  %153 = vmatpush.msra.mxu1 %v119_v13  ;;  %v546_v27 = vld [vmem:[%s786_s4 + $0x6c] sm:$0xff]  ;;  %v254_v30 = vunpack.c.l.bf16 %v537_v22  ;;  %v555_v32 = vld [vmem:[%s786_s4 + $0x60] sm:$0xff]  ;;  %v107_v33 = vunpack.c.h.bf16 %v64_v21  ;;  %v103_v34 = vunpack.c.l.bf16 %v62_v26  ;;  %v58_v38 = vld [vmem:[%s785_s3 + $0x54] sm:$0xff]  ;;  %v104_v40 = vunpack.c.h.bf16 %v62_v26 }
   0x7   :  { %281 = vmatpush.msra.mxu3 %v266_v9  ;;  %v251_v35 = vunpack.c.l.bf16 %v546_v27  ;;  %v73_v37 = vld [vmem:[%s785_s3 + $0xb0] sm:$0xf]  ;;  %v570_v39 = vld [vmem:[%s786_s4 + $0x54] sm:$0xff]  ;;  %v100_v41 = vunpack.c.l.bf16 %v60_v31  ;;  %v248_v42 = vunpack.c.l.bf16 %v555_v32  ;;  %v123_v43 = vunpack.c.l.bf16 %v75_v36  ;;  %v71_v44 = vld [vmem:[%s785_s3 + $0xa4] sm:$0xf] }
   0x8   :  { %134 = vmatpush.msra.mxu0 %v115_v14  ;;  %154 = vmatpush.msra.mxu1 %v116_v18  ;;  %v56_v45 = vld [vmem:[%s785_s3 + $0x48] sm:$0xff]  ;;  %v101_v47 = vunpack.c.h.bf16 %v60_v31  ;;  %v120_v48 = vunpack.c.l.bf16 %v73_v37 }
   0x9   :  { %282 = vmatpush.msra.mxu3 %v263_v15  ;;  %v585_v46 = vld [vmem:[%s786_s4 + $0x48] sm:$0xff] }
   0xa   :  { %135 = vmatpush.msra.mxu0 %v112_v19  ;;  %155 = vmatpush.msra.mxu1 %v113_v23 }
   0xb   :  { %283 = vmatpush.msra.mxu3 %v260_v20 }
   0xc   :  { %136 = vmatpush.msra.mxu0 %v109_v24  ;;  %156 = vmatpush.msra.mxu1 %v110_v28 }
   0xd   :  { %284 = vmatpush.msra.mxu3 %v257_v25 }
   0xe   :  { %137 = vmatpush.msra.mxu0 %v106_v29  ;;  %157 = vmatpush.msra.mxu1 %v107_v33 }
   0xf   :  { %285 = vmatpush.msra.mxu3 %v254_v30 }
  0x10   :  { %13 = vsyncpa [#allocation5], 0  ;;  %138 = vmatpush.msra.mxu0 %v103_v34  ;;  %v97_v49 = vunpack.c.l.bf16 %v58_v38  ;;  %v245_v50 = vunpack.c.l.bf16 %v570_v39  ;;  %v69_v51 = vld [vmem:[%s785_s3 + $0x98] sm:$0xf]  ;;  %v54_v52 = vld [vmem:[%s785_s3 + $0x3c] sm:$0xff]  ;;  %158 = vmatpush.msra.mxu1 %v104_v40  ;;  %v98_v54 = vunpack.c.h.bf16 %v58_v38  ;;  %v117_v55 = vunpack.c.l.bf16 %v71_v44  ;;  %s791_s0 = smov (!%p36_p0, %s782_s0), 319 }
  0x11   :  { %286 = vmatpush.msra.mxu3 %v251_v35  ;;  %v597_v53 = vld [vmem:[%s786_s4 + $0x3c] sm:$0xff]  ;;  %172 = vmatpush.msra.mxu2 %v123_v43  ;;  %v94_v56 = vunpack.c.l.bf16 %v56_v45  ;;  %v242_v57 = vunpack.c.l.bf16 %v585_v46  ;;  %v67_v58 = vld [vmem:[%s785_s3 + $0x8c] sm:$0xf]  ;;  %v52_v59 = vld [vmem:[%s785_s3 + $0x30] sm:$0xff]  ;;  %v95_v61 = vunpack.c.h.bf16 %v56_v45  ;;  %v114_v62 = vunpack.c.l.bf16 %v69_v51  ;;  %s38_s27 = scalar_lea.vmem %s783_s1, %s791_s0  ;;  %s395_s21 = sshll.u32 %s789_s7, 4  ;;  %s396_s21 = int_to_ptr.hbm [resolvable:$true] %s395_s21 }
  0x12   :  { %139 = vmatpush.msra.mxu0 %v100_v41  ;;  %159 = vmatpush.msra.mxu1 %v101_v47  ;;  %v618_v60 = vld [vmem:[%s786_s4 + $0x30] sm:$0xff]  ;;  %v91_v63 = vunpack.c.l.bf16 %v54_v52  ;;  %v239_v0 = vunpack.c.l.bf16 %v597_v53  ;;  %v65_v1 = vld [vmem:[%s785_s3 + $0x80] sm:$0xf]  ;;  %v50_v3 = vld [vmem:[%s785_s3 + $0x24] sm:$0xff]  ;;  %v92_v5 = vunpack.c.h.bf16 %v54_v52  ;;  %v111_v6 = vunpack.c.l.bf16 %v67_v58 }
  0x13   :  { %287 = vmatpush.msra.mxu3 %v248_v42  ;;  %173 = vmatpush.msra.mxu2 %v120_v48  ;;  %v630_v4 = vld [vmem:[%s786_s4 + $0x24] sm:$0xff]  ;;  %v88_v8 = vunpack.c.l.bf16 %v52_v59  ;;  %v236_v9 = vunpack.c.l.bf16 %v618_v60  ;;  %v63_v10 = vld [vmem:[%s785_s3 + $0x74] sm:$0xf]  ;;  %v48_v13 = vld [vmem:[%s785_s3 + $0x18] sm:$0xff]  ;;  %v89_v15 = vunpack.c.h.bf16 %v52_v59  ;;  %v108_v16 = vunpack.c.l.bf16 %v65_v1 }
  0x14   :  { %140 = vmatpush.msra.mxu0 %v97_v49  ;;  %160 = vmatpush.msra.mxu1 %v98_v54  ;;  %v646_v14 = vld [vmem:[%s786_s4 + $0x18] sm:$0xff]  ;;  %v85_v18 = vunpack.c.l.bf16 %v50_v3  ;;  %v233_v19 = vunpack.c.l.bf16 %v630_v4  ;;  %v61_v20 = vld [vmem:[%s785_s3 + $0x68] sm:$0xf]  ;;  %v46_v21 = vld [vmem:[%s785_s3 + $0xc] sm:$0xff]  ;;  %v86_v24 = vunpack.c.h.bf16 %v50_v3  ;;  %v105_v26 = vunpack.c.l.bf16 %v63_v10 }
  0x15   :  { %288 = vmatpush.msra.mxu3 %v245_v50  ;;  %174 = vmatpush.msra.mxu2 %v117_v55  ;;  %v658_v23 = vld [vmem:[%s786_s4 + $0xc] sm:$0xff]  ;;  %v40_v25 = vld [vmem:[%s38_s27] sm:$0x1]  ;;  %v82_v28 = vunpack.c.l.bf16 %v48_v13  ;;  %v230_v29 = vunpack.c.l.bf16 %v646_v14  ;;  %v59_v30 = vld [vmem:[%s785_s3 + $0x5c] sm:$0xf]  ;;  %v83_v34 = vunpack.c.h.bf16 %v48_v13  ;;  %v102_v35 = vunpack.c.l.bf16 %v61_v20 }
  0x16   :  { %141 = vmatpush.msra.mxu0 %v94_v56  ;;  %161 = vmatpush.msra.mxu1 %v95_v61  ;;  %v44_v31 = vld [vmem:[%s785_s3] sm:$0xff]  ;;  %v79_v36 = vunpack.c.l.bf16 %v46_v21  ;;  %v227_v37 = vunpack.c.l.bf16 %v658_v23  ;;  %v41_v38 = vunpack.c.l.bf16 %v40_v25  ;;  %v80_v40 = vunpack.c.h.bf16 %v46_v21  ;;  %v223_v44 = vld [vmem:[%s786_s4 + $0xbc] sm:$0xf]  ;;  %v57_v47 = vld [vmem:[%s785_s3 + $0x50] sm:$0xf] }
  0x17   :  { %289 = vmatpush.msra.mxu3 %v242_v57  ;;  %175 = vmatpush.msra.mxu2 %v114_v62  ;;  %v670_v33 = vld [vmem:[%s786_s4] sm:$0xff]  ;;  %v99_v41 = vunpack.c.l.bf16 %v59_v30  ;;  %v76_v42 = vunpack.c.l.bf16 %v44_v31  ;;  %v270_v45 = vunpack.c.h.bf16 %v496_v2  ;;  %v77_v49 = vunpack.c.h.bf16 %v44_v31  ;;  %v221_v2 = vld [vmem:[%s786_s4 + $0xb0] sm:$0xf]  ;;  %v53_v58 = vld [vmem:[%s785_s3 + $0x38] sm:$0xf] }
  0x18   :  { %142 = vmatpush.msra.mxu0 %v91_v63  ;;  %162 = vmatpush.msra.mxu1 %v92_v5  ;;  %v224_v43 = vunpack.c.l.bf16 %v670_v33  ;;  %v684_v48 = vld [vmem:[%s784_s2] sm:$0x1]  ;;  %v686_v50 = vmax.f32 %v41_v38, 0.0  ;;  %v267_v51 = vunpack.c.h.bf16 %v505_v7  ;;  %v271_v52 = vunpack.c.l.bf16 %v223_v44  ;;  %v55_v54 = vld [vmem:[%s785_s3 + $0x44] sm:$0xf] }
  0x19   :  { %290 = vmatpush.msra.mxu3 %v239_v0  ;;  %176 = vmatpush.msra.mxu2 %v111_v6  ;;  %v219_v55 = vld [vmem:[%s786_s4 + $0xa4] sm:$0xf]  ;;  %v96_v56 = vunpack.c.l.bf16 %v57_v47  ;;  %v264_v57 = vunpack.c.h.bf16 %v514_v11  ;;  %v268_v7 = vunpack.c.l.bf16 %v221_v2  ;;  %v217_v59 = vld [vmem:[%s786_s4 + $0x98] sm:$0xf]  ;;  %v93_v61 = vunpack.c.l.bf16 %v55_v54  ;;  %v51_v11 = vld [vmem:[%s785_s3 + $0x2c] sm:$0xf] }
  0x1a   :  { %143 = vmatpush.msra.mxu0 %v88_v8  ;;  %163 = vmatpush.msra.mxu1 %v89_v15  ;;  %v261_v62 = vunpack.c.h.bf16 %v519_v12  ;;  %v265_v63 = vunpack.c.l.bf16 %v219_v55  ;;  %v215_v0 = vld [vmem:[%s786_s4 + $0x8c] sm:$0xf]  ;;  %v90_v1 = vunpack.c.l.bf16 %v53_v58  ;;  %v258_v3 = vunpack.c.h.bf16 %v528_v17  ;;  %v49_v12 = vld [vmem:[%s785_s3 + $0x20] sm:$0xf]  ;;  %v47_v17 = vld [vmem:[%s785_s3 + $0x14] sm:$0xf] }
  0x1b   :  { %291 = vmatpush.msra.mxu3 %v236_v9  ;;  %177 = vmatpush.msra.mxu2 %v108_v16  ;;  %v262_v5 = vunpack.c.l.bf16 %v217_v59  ;;  %v213_v6 = vld [vmem:[%s786_s4 + $0x80] sm:$0xf]  ;;  %v87_v8 = vunpack.c.l.bf16 %v51_v11  ;;  %v255_v9 = vunpack.c.h.bf16 %v537_v22  ;;  %v259_v10 = vunpack.c.l.bf16 %v215_v0  ;;  %v211_v13 = vld [vmem:[%s786_s4 + $0x74] sm:$0xf]  ;;  %v45_v22 = vld [vmem:[%s785_s3 + $0x8] sm:$0xf] }
  0x1c   :  { %144 = vmatpush.msra.mxu0 %v85_v18  ;;  %164 = vmatpush.msra.mxu1 %v86_v24  ;;  %v84_v15 = vunpack.c.l.bf16 %v49_v12  ;;  %v252_v16 = vunpack.c.h.bf16 %v546_v27  ;;  %v256_v18 = vunpack.c.l.bf16 %v213_v6  ;;  %v81_v20 = vunpack.c.l.bf16 %v47_v17  ;;  %v207_v27 = vld [vmem:[%s786_s4 + $0x5c] sm:$0xf]  ;;  %v203_v31 = vld [vmem:[%s786_s4 + $0x44] sm:$0xf]  ;;  %v193_v44 = vld [vmem:[%s786_s4 + $0x8] sm:$0xf] }
  0x1d   :  { %292 = vmatpush.msra.mxu3 %v233_v19  ;;  %178 = vmatpush.msra.mxu2 %v105_v26  ;;  %v209_v19 = vld [vmem:[%s786_s4 + $0x68] sm:$0xf]  ;;  %v249_v21 = vunpack.c.h.bf16 %v555_v32  ;;  %v253_v24 = vunpack.c.l.bf16 %v211_v13  ;;  %v78_v25 = vunpack.c.l.bf16 %v45_v22  ;;  %v246_v26 = vunpack.c.h.bf16 %v570_v39 }
  0x1e   :  { %145 = vmatpush.msra.mxu0 %v82_v28  ;;  %165 = vmatpush.msra.mxu1 %v83_v34  ;;  %v250_v28 = vunpack.c.l.bf16 %v209_v19  ;;  %v243_v32 = vunpack.c.h.bf16 %v585_v46  ;;  %v247_v30 = vunpack.c.l.bf16 %v207_v27  ;;  %v240_v39 = vunpack.c.h.bf16 %v597_v53 }
  0x1f   :  { %293 = vmatpush.msra.mxu3 %v230_v29  ;;  %179 = vmatpush.msra.mxu2 %v102_v35  ;;  %v205_v29 = vld [vmem:[%s786_s4 + $0x50] sm:$0xf]  ;;  %v201_v35 = vld [vmem:[%s786_s4 + $0x38] sm:$0xf]  ;;  %v237_v46 = vunpack.c.h.bf16 %v618_v60  ;;  %v234_v53 = vunpack.c.h.bf16 %v630_v4  ;;  %v226_v47 = vunpack.c.l.bf16 %v193_v44 }
  0x20   :  { %146 = vmatpush.msra.mxu0 %v79_v36  ;;  %166 = vmatpush.msra.mxu1 %v80_v40  ;;  %v244_v34 = vunpack.c.l.bf16 %v205_v29  ;;  %v241_v36 = vunpack.c.l.bf16 %v203_v31  ;;  %v238_v38 = vunpack.c.l.bf16 %v201_v35  ;;  %v197_v40 = vld [vmem:[%s786_s4 + $0x20] sm:$0xf] }
  0x21   :  { %294 = vmatpush.msra.mxu3 %v227_v37  ;;  %180 = vmatpush.msra.mxu2 %v99_v41  ;;  %v199_v37 = vld [vmem:[%s786_s4 + $0x2c] sm:$0xf]  ;;  %v231_v41 = vunpack.c.h.bf16 %v646_v14  ;;  %v232_v4 = vunpack.c.l.bf16 %v197_v40 }
  0x22   :  { %147 = vmatpush.msra.mxu0 %v76_v42  ;;  %167 = vmatpush.msra.mxu1 %v77_v49  ;;  %v235_v60 = vunpack.c.l.bf16 %v199_v37  ;;  %v195_v42 = vld [vmem:[%s786_s4 + $0x14] sm:$0xf] }
  0x23   :  { %295 = vmatpush.msra.mxu3 %v224_v43  ;;  %148 = vmatmul.f32.vlgmr.msra.gmra.mxu0 %v686_v50  ;;  %v228_v43 = vunpack.c.h.bf16 %v658_v23  ;;  %v229_v14 = vunpack.c.l.bf16 %v195_v42  ;;  %v124_v23 = vld [vmem:[%s787_s5] sm:$0x7]  ;;  %s446_s5 = smov [#allocation4]  }
  0x24   :  { %300 = vmatpush.msrb.mxu0 %v270_v45  ;;  %296 = vmatmul.f32.vlgmr.msra.gmra.mxu3 %v684_v48  ;;  %v225_v45 = vunpack.c.h.bf16 %v670_v33  ;;  %v272_v33 = vld [vmem:[%s788_s6] sm:$0x7]  ;;  %v126_v49 = vperm.slane %v124_v23, 0  ;;  %v127_v58 = vperm.slane %v124_v23, 1  ;;  %s393_s6 = sshll.u32 %s446_s5, 4  ;;  %s394_s6 = int_to_ptr.vmem [resolvable:$true] %s393_s6 }
  0x25   :  { %320 = vmatpush.msrb.mxu1 %v271_v52  ;;  %181 = vmatpush.msra.mxu2 %v96_v56  ;;  %v274_v2 = vperm.slane %v272_v33, 0  ;;  %v276_v17 = vperm.slane %v272_v33, 2 }
  0x26   :  { %301 = vmatpush.msrb.mxu0 %v267_v51  ;;  %168 = vmatmul.f32.vlgmr.msra.gmra.mxu1 %v686_v50 }
  0x27   :  { %321 = vmatpush.msrb.mxu1 %v268_v7  ;;  %182 = vmatpush.msra.mxu2 %v93_v61 }
  0x28   :  { %302 = vmatpush.msrb.mxu0 %v264_v57 }
  0x29   :  { %322 = vmatpush.msrb.mxu1 %v265_v63  ;;  %183 = vmatpush.msra.mxu2 %v90_v1 }
  0x2a   :  { %303 = vmatpush.msrb.mxu0 %v261_v62  ;;  %v275_v62 = vperm.slane %v272_v33, 1 }
  0x2b   :  { %323 = vmatpush.msrb.mxu1 %v262_v5  ;;  %184 = vmatpush.msra.mxu2 %v87_v8 }
  0x2c   :  { %304 = vmatpush.msrb.mxu0 %v258_v3 }
  0x2d   :  { %324 = vmatpush.msrb.mxu1 %v259_v10  ;;  %185 = vmatpush.msra.mxu2 %v84_v15 }
  0x2e   :  { %305 = vmatpush.msrb.mxu0 %v255_v9 }
  0x2f   :  { %325 = vmatpush.msrb.mxu1 %v256_v18  ;;  %186 = vmatpush.msra.mxu2 %v81_v20  ;;  %v128_v20 = vperm.slane %v124_v23, 2 }
  0x30   :  { %306 = vmatpush.msrb.mxu0 %v252_v16 }
  0x31   :  { %326 = vmatpush.msrb.mxu1 %v253_v24  ;;  %187 = vmatpush.msra.mxu2 %v78_v25 }
  0x32   :  { %307 = vmatpush.msrb.mxu0 %v249_v21  ;;  %188 = vmatmul.f32.vlgmr.msra.gmra.mxu2 %v686_v50 }
  0x33   :  { %327 = vmatpush.msrb.mxu1 %v250_v28 }
  0x34   :  { %308 = vmatpush.msrb.mxu0 %v246_v26 }
  0x35   :  { %328 = vmatpush.msrb.mxu1 %v247_v30 }
  0x36   :  { %309 = vmatpush.msrb.mxu0 %v243_v32 }
  0x37   :  { %329 = vmatpush.msrb.mxu1 %v244_v34 }
  0x38   :  { %310 = vmatpush.msrb.mxu0 %v240_v39 }
  0x39   :  { %330 = vmatpush.msrb.mxu1 %v241_v36 }
  0x3a   :  { %311 = vmatpush.msrb.mxu0 %v237_v46 }
  0x3b   :  { %331 = vmatpush.msrb.mxu1 %v238_v38 }
  0x3c   :  { %312 = vmatpush.msrb.mxu0 %v234_v53 }
  0x3d   :  { %332 = vmatpush.msrb.mxu1 %v235_v60 }
  0x3e   :  { %313 = vmatpush.msrb.mxu0 %v231_v41 }
  0x3f   :  { %333 = vmatpush.msrb.mxu1 %v232_v4 }
  0x40   :  { %314 = vmatpush.msrb.mxu0 %v228_v43 }
  0x41   :  { %334 = vmatpush.msrb.mxu1 %v229_v14 }
  0x42   :  { %315 = vmatpush.msrb.mxu0 %v225_v45 }
  0x43   :  { %316 = vmatmul.f32.vlgmr.msrb.gmra.mxu0 %v684_v48  ;;  %335 = vmatpush.msrb.mxu1 %v226_v47 }
  0x44   :  { %336 = vmatmul.f32.vlgmr.msrb.gmra.mxu1 %v684_v48 }
  0xa0   :  { %v149_v50 = vpop.f32.mrf.mxu0 }
  0xa1   :  { %v150_v51 = vadd.f32 %v149_v50, %v126_v49 }
  0xa3   :  { %v169_v59 = vpop.f32.mrf.mxu1 }
  0xa4   :  { %v170_v11 = vadd.f32 %v169_v59, %v127_v58 }
  0xa7   :  { %v297_v52 = vpop.f32.mrf.mxu3 }
  0xa8   :  { %v298_v54 = vadd.f32 %v297_v52, %v274_v2 }
  0xaa   :  { %v340_v55 = vadd.f32 %v298_v54, %v150_v51 }
  0xac   :  { %v407_v56 = vmul.f32 -1.442695, %v340_v55 }
  0xae   :  { %410 = vpow2.f32 %v407_v56 }
  0xb4   :  { %v411_v57 = vpop.eup %410 }
  0xb5   :  { %v344_v7 = vadd.f32 1.0, %v411_v57  ;;  %v189_v24 = vpop.f32.mrf.mxu2 }
  0xb6   :  { %v190_v25 = vadd.f32 %v189_v24, %v128_v20 }
  0xb7   :  { %412 = vrcp.f32 %v344_v7  ;;  %vm350_vm0 = vweird.f32 %v344_v7  ;;  %v356_v8 = vand.u32 2147483648, %v344_v7  ;;  %v354_v10 = vand.u32 2147483647, %v344_v7 }
  0xb9   :  { %v357_v16 = vor.u32 1.1754944e-38, %v356_v8  ;;  %vm355_vm3 = vcmp.eq.f32.partialorder %v354_v10, 8.507059e+37 }
  0xbd   :  { %v413_v61 = vpop.eup %412 }
  0xbe   :  { %v346_v63 = vmul.f32 %v413_v61, %v344_v7  ;;  %vm351_vm1 = vweird.f32 %v413_v61 }
  0xbf   :  { %vm352_vm2 = vmor %vm350_vm0, %vm351_vm1 }
  0xc0   :  { %v317_v0 = vpop.f32.mrf.mxu0  ;;  %v347_v3 = vsub.f32 1.0, %v346_v63 }
  0xc1   :  { %v318_v1 = vadd.f32 %v317_v0, %v275_v62  ;;  %v337_v15 = vpop.f32.mrf.mxu1 }
  0xc2   :  { %v348_v6 = vmul.f32 %v413_v61, %v347_v3  ;;  %v338_v19 = vadd.f32 %v337_v15, %v276_v17 }
  0xc3   :  { %v360_v5 = vadd.f32 %v318_v1, %v170_v11 }
  0xc4   :  { %v349_v9 = vadd.f32 %v413_v61, %v348_v6 }
  0xc5   :  { %v408_v12 = vmul.f32 -1.442695, %v360_v5 }
  0xc6   :  { %v353_v22 = vsel %vm352_vm2, %v413_v61, %v349_v9 }
  0xc7   :  { %414 = vpow2.f32 %v408_v12  ;;  %v358_v21 = vsel %vm355_vm3, %v357_v16, %v353_v22 }
  0xc8   :  { %v380_v27 = vmul.f32 %v358_v21, %v338_v19 }
  0xca   :  { %v381_v29 = vadd.f32 %v380_v27, %v190_v25 }
  0xcd   :  { %v415_v13 = vpop.eup %414 }
  0xce   :  { %v364_v18 = vadd.f32 1.0, %v415_v13 }
  0xd0   :  { %416 = vrcp.f32 %v364_v18  ;;  %v376_v30 = vand.u32 2147483648, %v364_v18  ;;  %v374_v39 = vand.u32 2147483647, %v364_v18  ;;  %vm370_vm5 = vweird.f32 %v364_v18 }
  0xd1   :  { %418 = vtanh.f32 %v381_v29 }
  0xd2   :  { %v377_v35 = vor.u32 1.1754944e-38, %v376_v30  ;;  %vm375_vm7 = vcmp.eq.f32.partialorder %v374_v39, 8.507059e+37 }
  0xd6   :  { %v417_v26 = vpop.eup %416 }
  0xd7   :  { %v366_v28 = vmul.f32 %v417_v26, %v364_v18  ;;  %vm371_vm4 = vweird.f32 %v417_v26  ;;  %v419_v53 = vpop.eup %418 }
  0xd8   :  { %vm372_vm6 = vmor %vm370_vm5, %vm371_vm4 }
  0xd9   :  { %v367_v32 = vsub.f32 1.0, %v366_v28 }
  0xdb   :  { %v368_v31 = vmul.f32 %v417_v26, %v367_v32 }
  0xdd   :  { %v369_v34 = vadd.f32 %v417_v26, %v368_v31 }
  0xdf   :  { %v373_v46 = vsel %vm372_vm6, %v417_v26, %v369_v34 }
  0xe0   :  { %v378_v36 = vsel %vm375_vm7, %v377_v35, %v373_v46 }
  0xe1   :  { %v383_v37 = vsub.f32 1.0, %v378_v36  ;;  %v385_v40 = vmul.f32 %v378_v36, %v684_v48 }
  0xe3   :  { %v384_v38 = vmul.f32 %v419_v53, %v383_v37 }
  0xe5   :  { %v386_v41 = vadd.f32 %v385_v40, %v384_v38 }
  0xe7   :  { %387 = vst [vmem:[#allocation4] sm:$0x1] %v386_v41 }
  0xe8   :  { %398 = dma.vmem_to_hbm [thread:$0]  %s394_s6, 16, %s396_s21, [#allocation5]  }
  0xe9   :  { %444 = dma.done.wait [#allocation5], 16  }
  0xea   :  { %445 = vsyncadd [#allocation5], 4294967280 }
  0xeb   :  { %403 = vsyncpa [#allocation5], 1 }

</bundles_post_ra>
